<compile_context>
chip_gen: v7x
topology: tpu7x:2x2x1
jax: 0.10.0
libtpu: 0.0.40
codegen_flags: <defaults>
</compile_context>

<pallas_src>
import functools

import jax
import jax.numpy as jnp
from jax.experimental import pallas as pl
from jax.experimental.pallas import tpu as pltpu


def make_positional_encoding(embedding_size: int, max_seq_len: int = 5000,
                             dtype=jnp.float32):
    """Replicates the buffer built in PositionalEncoding.__init__."""
    base = 10000.0
    positions = jnp.arange(max_seq_len, dtype=jnp.float32)[:, None]           # (L, 1)
    freqs = jnp.exp(
        -jnp.log(base) * jnp.arange(0, embedding_size, 2, dtype=jnp.float32)
        / embedding_size
    )                                                                          # (E/2,)
    angles = positions * freqs                                                 # (L, E/2)
    pe = jnp.zeros((max_seq_len, embedding_size), dtype=jnp.float32)
    pe = pe.at[:, 0::2].set(jnp.sin(angles))
    pe = pe.at[:, 1::2].set(jnp.cos(angles))
    return pe.astype(dtype)


def _pos_enc_kernel(x_ref, pe_ref, o_ref, *, scale, apply_scale):
    # x_ref:  (TB, TC) tile of the flattened (B, S*E) embedding
    # pe_ref: (1, TC)  tile of the flattened (1, S*E) PE row (broadcast over TB)
    # o_ref:  (TB, TC)
    x = x_ref[...]
    if apply_scale:                       # static Python branch (scale is a const)
        x = x * scale
    o_ref[...] = (x + pe_ref[...]).astype(o_ref.dtype)


def _pick_tiles(batch: int, flat_cols: int, itemsize: int,
                target_bytes: int = 2 << 20):
    """Pick (TB, TC) tile sizes.

    TB: 8 (sublane multiple) when it divides batch, else full batch.
    TC: largest multiple-of-128 divisor of flat_cols such that the x tile is
        ~target_bytes, else full flat_cols (legal: block dim == array dim).
    """
    tb = 8 if (batch % 8 == 0) else batch
    if flat_cols % 128 == 0:
        cap = max(128, target_bytes // (tb * itemsize))
        tc = 128
        d = 128
        limit = min(flat_cols, cap)
        while d <= limit:
            if flat_cols % d == 0:
                tc = d
            d += 128
    else:
        tc = flat_cols
    return tb, tc


def positional_encoding_forward(embedding: jax.Array,
                                pos_enc_table: jax.Array,
                                embedding_scale_factor: float = 1.0):
    """embedding: (B, S, E); pos_enc_table: (max_seq_len, E)."""
    B, S, E = embedding.shape
    max_seq_len, pe_E = pos_enc_table.shape
    assert pe_E == E, "PE table embedding size mismatch"
    assert S <= max_seq_len, "sequence length exceeds max_seq_len of PE table"

    dtype = embedding.dtype
    itemsize = jnp.dtype(dtype).itemsize
    SE = S * E

    # Flatten (S, E) together: the op is elementwise, so this is legal and makes
    # the lane axis a large multiple of 128 (lane-dense stores).
    x2 = embedding.reshape(B, SE)
    pe_flat = pos_enc_table[:S, :].astype(dtype).reshape(1, SE)   # cast in wrapper

    tb, tc = _pick_tiles(B, SE, itemsize)
    n_row = B // tb
    n_col = SE // tc

    scale = float(embedding_scale_factor)
    kernel = functools.partial(_pos_enc_kernel, scale=scale,
                               apply_scale=(scale != 1.0))

    cost = pl.CostEstimate(
        flops=2 * B * SE,
        transcendentals=0,
        bytes_accessed=2 * B * SE * itemsize + SE * itemsize,
    )

    out2 = pl.pallas_call(
        kernel,
        out_shape=jax.ShapeDtypeStruct((B, SE), dtype),
        grid_spec=pltpu.PrefetchScalarGridSpec(
            num_scalar_prefetch=0,
            # Column tiles on the OUTER axis, rows inner: the PE block index
            # depends only on the outer axis, so its tile is fetched once per
            # column tile instead of once per (row, column) pair.
            grid=(n_col, n_row),
            in_specs=[
                pl.BlockSpec((tb, tc), lambda c, r: (r, c)),   # embedding tile
                pl.BlockSpec((1, tc), lambda c, r: (0, c)),    # PE tile (reused)
            ],
            out_specs=pl.BlockSpec((tb, tc), lambda c, r: (r, c)),
        ),
        compiler_params=pltpu.CompilerParams(
            dimension_semantics=("parallel", "parallel"),
        ),
        cost_estimate=cost,
    )(x2, pe_flat)

    return out2.reshape(B, S, E)


if __name__ == "__main__":
    key = jax.random.PRNGKey(0)
    k_small, k_big = jax.random.split(key)

    # --- Small f32 test (shapes consistent with the module's forward) -------
    B, S, E = 2, 8, 32
    scale = 2.0
    pe_table = make_positional_encoding(E, max_seq_len=64)
    x = jax.random.normal(k_small, (B, S, E), dtype=jnp.float32)

    out = jax.block_until_ready(positional_encoding_forward(x, pe_table, scale))
    ref = x * scale + pe_table[:S, :][None, :, :]
    assert out.shape == (B, S, E)
    assert jnp.allclose(out, ref, atol=1e-6), "f32 mismatch vs reference"

    # --- Multi-tile f32 test (exercises 2-D grid + scale==1.0 fast path) ----
    B2, S2, E2 = 8, 512, 256
    pe_table2 = make_positional_encoding(E2, max_seq_len=1024)
    x_big = jax.random.normal(k_big, (B2, S2, E2), dtype=jnp.float32)

    out_big = jax.block_until_ready(
        positional_encoding_forward(x_big, pe_table2, 1.0))
    ref_big = x_big + pe_table2[:S2, :][None, :, :]
    assert jnp.allclose(out_big, ref_big, atol=1e-6), "multi-tile mismatch"

    # --- bf16 dtype test (PE cast handled in wrapper, no f32 promotion) -----
    x_bf16 = x.astype(jnp.bfloat16)
    out_bf16 = jax.block_until_ready(
        positional_encoding_forward(x_bf16, pe_table, scale))
    ref_bf16 = x_bf16 * scale + pe_table[:S, :].astype(jnp.bfloat16)[None, :, :]
    assert out_bf16.dtype == jnp.bfloat16
    assert jnp.allclose(out_bf16.astype(jnp.float32),
                        ref_bf16.astype(jnp.float32), atol=1e-2), "bf16 mismatch"

    print("KERNEL_OK")
</pallas_src>

<mosaic_0001>
module attributes {stable_mosaic.version = 11 : i64} {
  func.func @_pos_enc_kernel(%arg0: i32, %arg1: i32, %arg2: memref<2x256xf32, #tpu.memory_space<vmem>>, %arg3: memref<1x256xf32, #tpu.memory_space<vmem>>, %arg4: memref<2x256xf32, #tpu.memory_space<vmem>>) attributes {dimension_semantics = [#tpu.dimension_semantics<parallel>, #tpu.dimension_semantics<parallel>], iteration_bounds = array<i64: 1, 1>, scalar_prefetch = 0 : i64, scratch_operands = 0 : i64, tpu.core_type = #tpu.core_type<tc>, window_params = [{transform_indices = @transform_0, window_bounds = array<i64: 2, 256>}, {transform_indices = @transform_1, window_bounds = array<i64: 1, 256>}, {transform_indices = @transform_2, window_bounds = array<i64: 2, 256>}]} {
    %c0 = arith.constant 0 : index
    %c0_0 = arith.constant 0 : index
    %0 = vector.load %arg2[%c0, %c0_0] : memref<2x256xf32, #tpu.memory_space<vmem>>, vector<2x256xf32>
    %cst = arith.constant 2.000000e+00 : f32
    %1 = vector.broadcast %cst : f32 to vector<2x256xf32>
    %2 = arith.mulf %0, %1 : vector<2x256xf32>
    %c0_1 = arith.constant 0 : index
    %c0_2 = arith.constant 0 : index
    %3 = vector.load %arg3[%c0_1, %c0_2] : memref<1x256xf32, #tpu.memory_space<vmem>>, vector<1x256xf32>
    %4 = vector.broadcast %3 : vector<1x256xf32> to vector<2x256xf32>
    %5 = arith.addf %2, %4 : vector<2x256xf32>
    %c0_3 = arith.constant 0 : index
    %c0_4 = arith.constant 0 : index
    %6 = vector.load %arg4[%c0_3, %c0_4] : memref<2x256xf32, #tpu.memory_space<vmem>>, vector<2x256xf32>
    tpu.vector_store %arg4[%c0_3, %c0_4], %5 {strides = array<i32>} : memref<2x256xf32, #tpu.memory_space<vmem>>, vector<2x256xf32>,
    return
  }
  func.func @transform_0(%arg0: i32, %arg1: i32) -> (i32, i32) {
    %c0_i32 = arith.constant 0 : i32
    return %arg1, %arg0 : i32, i32
  }
  func.func @transform_1(%arg0: i32, %arg1: i32) -> (i32, i32) {
    %c0_i32 = arith.constant 0 : i32
    %c0_i32_0 = arith.constant 0 : i32
    return %c0_i32, %arg0 : i32, i32
  }
  func.func @transform_2(%arg0: i32, %arg1: i32) -> (i32, i32) {
    %c0_i32 = arith.constant 0 : i32
    return %arg1, %arg0 : i32, i32
  }
}

</mosaic_0001>

<bundles_post_ra>
// kernel: tpu_custom_call.1
= control target key start
LH: loop header
LB: loop body
LE: loop exit
PB: predicated region body
PF: predicated region fallthrough
CT: control target
= control target key end

     0   :  { %7 = vsyncpa [#allocation3], 0  ;;  %s158_s0 = inlined_call_operand.hbm [shape: f32[2,256], index: 0, kind: input, shape index: {}]   ;;  %s159_s1 = inlined_call_operand.vmem [shape: f32[1,256], index: 1, kind: input, shape index: {}]   ;;  %s160_s2 = inlined_call_operand.hbm [shape: f32[2,256], index: 2, kind: output, shape index: {}]  }
   0x1   :  { %8 = vsyncpa [#allocation4], 0  ;;  %s113_s9 = smov [#allocation2]   ;;  %s65_s13 = scalar_lea.hbm %s158_s0, 64 }
   0x2   :  { %s15_s10 = sshll.u32 %s113_s9, 4  ;;  %p66_p0 = scmp.ne.s32.totalorder %s158_s0, %s65_s13  ;;  %s16_s10 = int_to_ptr.vmem [resolvable:$true] %s15_s10 }
   0x3   :  { %p69_p1 = scmp.lt.u32.totalorder %s65_s13, %s158_s0 }
   0x5   :  { %p71_p2 = pnand %p69_p1, %p66_p0 }
   0x7   :  { %74 = shalt.err (!%p71_p2)
}
   0x8   :  { %s75_s18 = scalar_lea.vmem %s16_s10, 64  ;;  %p80_p4 = scmp.lt.s32.totalorder %s16_s10, %s16_s10 }
   0x9   :  { %p76_p3 = scmp.ne.s32.totalorder %s16_s10, %s75_s18  ;;  %p81_p5 = scmp.lt.s32.totalorder %s75_s18, %s75_s18 }
   0xb   :  { %p82_p6 = por %p81_p5, %p80_p4 }
   0xd   :  { %p83_p7 = pnand %p82_p6, %p76_p3 }
   0xf   :  { %86 = shalt.err (!%p83_p7)
}
  0x10   :  { %18 = dma.hbm_to_vmem [thread:$0]  %s158_s0, 64, %s16_s10, [#allocation3]  }
  0x11   :  { %109 = dma.done.wait [#allocation3], 64  }
  0x12   :  { %110 = vsyncadd [#allocation3], 4294967232  ;;  %v28_v0 = vlaneseq  ;;  %v114_v1 = vmov 1983009808   ;;  %v24_v7 = vld [vmem:[#allocation2] sm:$0xf] }
  0x13   :  { %v38_v2 = vunpack.c.l.s4 %v114_v1  ;;  %v26_v8 = vld [vmem:[%s159_s1] sm:$0x3]  ;;  %v25_v12 = vmul.f32 2.0, %v24_v7  ;;  %s115_s0 = smov [#allocation5]  }
  0x14   :  { %v29_v3 = vshrl.u32 %v28_v0, 7  ;;  %s53_s23 = sshll.u32 %s115_s0, 4  ;;  %s54_s23 = int_to_ptr.vmem [resolvable:$true] %s53_s23 }
  0x15   :  { %v39_v6 = vunpack.c.0.s8 %v38_v2  ;;  %s87_s24 = scalar_lea.vmem %s54_s23, 64  ;;  %p92_p9 = scmp.lt.s32.totalorder %s54_s23, %s54_s23 }
  0x16   :  { %v30_v4 = vsub.s32 0, %v29_v3  ;;  %v34_v5 = vsub.s32 1, %v29_v3  ;;  %p88_p8 = scmp.ne.s32.totalorder %s54_s23, %s87_s24  ;;  %p93_p10 = scmp.lt.s32.totalorder %s87_s24, %s87_s24 }
  0x17   :  { %v42_v11 = vsub.s32 %v39_v6, %v29_v3 }
  0x18   :  { %v31_v9 = vrot.slane %v26_v8, %v30_v4  ;;  %v35_v10 = vrot.slane %v26_v8, %v34_v5  ;;  %p94_p11 = por %p93_p10, %p92_p9 }
  0x1a   :  { %v36_v13 = vcombine.low %v31_v9, %v35_v10  ;;  %p95_p12 = pnand %p94_p11, %p88_p8 }
  0x1c   :  { %v43_v14 = vrot.slane %v36_v13, %v42_v11 }
  0x1e   :  { %v45_v15 = vadd.f32 %v43_v14, %v25_v12 }
  0x20   :  { %46 = vst [vmem:[#allocation5] sm:$0xf] %v45_v15 }
  0x21   :  { %98 = shalt.err (!%p95_p12)
}
  0x22   :  { %s99_s26 = scalar_lea.hbm %s160_s2, 64 }
  0x23   :  { %p100_p13 = scmp.ne.s32.totalorder %s160_s2, %s99_s26  ;;  %p103_p0 = scmp.lt.u32.totalorder %s99_s26, %s160_s2 }
  0x25   :  { %p105_p1 = pnand %p103_p0, %p100_p13 }
  0x27   :  { %108 = shalt.err (!%p105_p1)
}
  0x28   :  { %56 = dma.vmem_to_hbm [thread:$0]  %s54_s23, 64, %s160_s2, [#allocation4]  }
  0x29   :  { %111 = dma.done.wait [#allocation4], 64  }
  0x2a   :  { %112 = vsyncadd [#allocation4], 4294967232 }
  0x2b   :  { %60 = vsyncpa [#allocation3], 1 }
  0x2c   :  { %61 = vsyncpa [#allocation4], 1 }

</bundles_post_ra>
